<compile_context>
chip_gen: v6e
topology: v6e:2x2x1
jax: 0.10.0
libtpu: 0.0.40
codegen_flags: <defaults>
</compile_context>

<pallas_src>
import jax
import jax.numpy as jnp
from jax.experimental import pallas as pl
from jax.experimental.pallas import tpu as pltpu


def _self_attn_pool_kernel(x_ref, w_ref, o_ref):
    # x_ref: (B, T, H)   w_ref: (1, H)   o_ref: (B, H)
    x = x_ref[...]                                   # native dtype (no full upcast)
    w = w_ref[...].astype(x.dtype)                   # (1, H), cast once

    # Attention scores via VPU multiply + lane (H) reduce, accumulated in f32.
    # Result is lane-dense 2-D (B, T): T lives on lanes for the softmax below.
    scores = jnp.sum(x * w[None, :, :], axis=-1, dtype=jnp.float32)      # (B, T)

    # Numerically-stable softmax numerator over T (lane reduce / EUP exp at full
    # lane occupancy). Normalization is deferred to the (B, H) result.
    m = jnp.max(scores, axis=-1, keepdims=True)                          # (B, 1)
    e = jnp.exp(scores - m)                                              # (B, T)
    denom = jnp.sum(e, axis=-1, keepdims=True)                           # (B, 1)

    # Unnormalized weighted sum over T (sublane reduce), f32 accumulation.
    # Single relayout of the (B, T) weights for the broadcast against x.
    pooled = jnp.sum(x * e[:, :, None].astype(x.dtype), axis=1,
                     dtype=jnp.float32)                                  # (B, H)

    # One exact divide on the small (B, H) tile -- off the hot path, no approx error.
    o_ref[...] = (pooled / denom).astype(o_ref.dtype)


def _round_up(x, m):
    return (x + m - 1) // m * m


def _vmem_budget_and_block_target(itemsize):
    """Scoped-VMEM limit to request and padded-bytes target for one input block."""
    try:
        physical = int(pltpu.get_tpu_info().vmem_capacity_bytes)
    except Exception:
        physical = 64 * 1024 * 1024  # conservative fallback (v7x-sized VMEM)

    # Explicit scoped-VMEM limit: 3/4 of physical, capped at 96 MiB (headroom on all
    # of v5e/v6e (128 MiB physical) and v7x (64 MiB physical)).
    vmem_limit = min(96 * 1024 * 1024, (physical * 3) // 4)

    # Per-block VMEM usage model (padded bytes):
    #   2 x input block (double-buffered)  +  ~2 f32 (B,T,H) temporaries (x*w, x*e)
    # = block_bytes * (2 + 8 / itemsize)   -> f32: 4x, bf16: 6x.
    factor = 2 + 8 // itemsize
    mem_cap = (vmem_limit * 3 // 4) // factor          # keep ~25% slack

    # Generation-aware per-block target: push harder on fast-HBM / small-VMEM chips.
    gen_target = 16 * 1024 * 1024 if physical <= 64 * 1024 * 1024 else 8 * 1024 * 1024
    return vmem_limit, max(1, min(gen_target, mem_cap))


def _choose_block_batch(N, T, H, itemsize, target_block_bytes):
    """Pick B (sequences per grid step) from the padded-layout VMEM budget."""
    sublane = max(1, 8 * (4 // itemsize))              # 8 f32 / 16 bf16 / 32 int8
    # Padded footprint of one (T, H) sequence in VMEM (lanes -> 128, sublanes -> 8/16).
    per_seq = _round_up(max(T, 1), sublane) * _round_up(max(H, 1), 128) * itemsize

    b = max(1, target_block_bytes // per_seq)
    b = min(b, N)

    # Keep at least 2 grid steps when possible so the v7x megacore split gets work.
    if N > sublane:
        b = min(b, pl.cdiv(N, 2))

    # Sublane-align B when B < N: dense (unmasked) output stores and satisfies the
    # (8,128) rule for the (B, H) output block. (B == N equals the full dim -> ok.)
    if b < N:
        b = max(sublane, (b // sublane) * sublane)
        b = min(b, N)
    return b


def self_attention_pooling(batch_rep, w, b):
    """batch_rep: (N, T, H); w: (H, 1); b: (1, 1). Returns (N, H).

    Note: `b` is accepted to mirror nn.Linear(H, 1) but is not used inside the
    kernel -- softmax is shift-invariant, so the scalar bias cancels exactly.
    """
    del b  # mathematically a no-op for the pooled output
    N, T, H = batch_rep.shape
    itemsize = batch_rep.dtype.itemsize

    vmem_limit, block_target = _vmem_budget_and_block_target(itemsize)
    B = _choose_block_batch(N, T, H, itemsize, block_target)
    grid = (pl.cdiv(N, B),)

    w_row = w.reshape(1, H)  # present weights lane-dense: (1, H)

    return pl.pallas_call(
        _self_attn_pool_kernel,
        out_shape=jax.ShapeDtypeStruct((N, H), batch_rep.dtype),
        grid_spec=pltpu.PrefetchScalarGridSpec(
            num_scalar_prefetch=0,
            grid=grid,
            in_specs=[
                pl.BlockSpec((B, T, H), lambda n: (n, 0, 0)),   # B sequences per step
                pl.BlockSpec((1, H), lambda n: (0, 0)),         # W row (replicated)
            ],
            out_specs=pl.BlockSpec((B, H), lambda n: (n, 0)),
        ),
        compiler_params=pltpu.CompilerParams(
            dimension_semantics=("parallel",),   # megacore split on v7x
            vmem_limit_bytes=vmem_limit,         # raise scoped VMEM explicitly
        ),
    )(batch_rep, w_row)


def reference(batch_rep, w, b):
    scores = jnp.einsum("nth,ho->nt", batch_rep, w) + b[0, 0]     # (N, T)
    att = jax.nn.softmax(scores, axis=1)[..., None]               # (N, T, 1)
    return jnp.sum(batch_rep * att, axis=1)                       # (N, H)


if __name__ == "__main__":
    key = jax.random.PRNGKey(0)
    N, T, H = 16, 8, 32   # small demo shapes; B=8 -> grid=(2,) so both TCs get work

    k_x, k_w, k_b = jax.random.split(key, 3)
    batch_rep = jax.random.normal(k_x, (N, T, H), dtype=jnp.float32)

    # Deterministic parameter init mimicking nn.Linear(H, 1): U(-1/sqrt(H), 1/sqrt(H)).
    bound = 1.0 / jnp.sqrt(jnp.float32(H))
    w = jax.random.uniform(k_w, (H, 1), dtype=jnp.float32, minval=-bound, maxval=bound)
    b = jax.random.uniform(k_b, (1, 1), dtype=jnp.float32, minval=-bound, maxval=bound)

    out = self_attention_pooling(batch_rep, w, b)
    out = jax.block_until_ready(out)

    ref = reference(batch_rep, w, b)
    assert out.shape == (N, H)
    # Exact f32 normalization (no approx reciprocal) -> tight tolerance.
    assert jnp.allclose(out, ref, atol=1e-4, rtol=1e-4), (out, ref)

    print("KERNEL_OK")
</pallas_src>

<mosaic_0001>
module attributes {stable_mosaic.version = 11 : i64} {
  func.func @_self_attn_pool_kernel(%arg0: i32, %arg1: memref<8x8x32xf32, #tpu.memory_space<vmem>>, %arg2: memref<1x32xf32, #tpu.memory_space<vmem>>, %arg3: memref<8x32xf32, #tpu.memory_space<vmem>>) attributes {dimension_semantics = [#tpu.dimension_semantics<parallel>], iteration_bounds = array<i64: 2>, scalar_prefetch = 0 : i64, scratch_operands = 0 : i64, tpu.core_type = #tpu.core_type<tc>, window_params = [{transform_indices = @transform_0, window_bounds = array<i64: 8, 8, 32>}, {pipeline_mode = #tpu.pipeline_mode<synchronous>, transform_indices = @transform_1, window_bounds = array<i64: 1, 32>}, {transform_indices = @transform_2, window_bounds = array<i64: 8, 32>}]} {
    %c0 = arith.constant 0 : index
    %c0_0 = arith.constant 0 : index
    %c0_1 = arith.constant 0 : index
    %0 = vector.load %arg1[%c0, %c0_0, %c0_1] : memref<8x8x32xf32, #tpu.memory_space<vmem>>, vector<8x8x32xf32>
    %c0_2 = arith.constant 0 : index
    %c0_3 = arith.constant 0 : index
    %1 = vector.load %arg2[%c0_2, %c0_3] : memref<1x32xf32, #tpu.memory_space<vmem>>, vector<1x32xf32>
    %2 = vector.shape_cast %1 : vector<1x32xf32> to vector<1x1x32xf32>
    %3 = vector.broadcast %2 : vector<1x1x32xf32> to vector<8x8x32xf32>
    %4 = arith.mulf %0, %3 : vector<8x8x32xf32>
    %cst = arith.constant dense<0.000000e+00> : vector<8x8xf32>
    %5 = vector.multi_reduction <add>, %4, %cst [2] : vector<8x8x32xf32> to vector<8x8xf32>
    %cst_4 = arith.constant dense<0xFF800000> : vector<8xf32>
    %6 = vector.multi_reduction <maximumf>, %5, %cst_4 [1] : vector<8x8xf32> to vector<8xf32>
    %7 = vector.shape_cast %6 : vector<8xf32> to vector<8x1xf32>
    %8 = vector.broadcast %7 : vector<8x1xf32> to vector<8x8xf32>
    %9 = arith.subf %5, %8 : vector<8x8xf32>
    %10 = math.exp %9 : vector<8x8xf32>
    %cst_5 = arith.constant dense<0.000000e+00> : vector<8xf32>
    %11 = vector.multi_reduction <add>, %10, %cst_5 [1] : vector<8x8xf32> to vector<8xf32>
    %12 = vector.shape_cast %11 : vector<8xf32> to vector<8x1xf32>
    %13 = vector.shape_cast %10 : vector<8x8xf32> to vector<8x8x1xf32>
    %14 = vector.broadcast %13 : vector<8x8x1xf32> to vector<8x8x32xf32>
    %15 = arith.mulf %0, %14 : vector<8x8x32xf32>
    %cst_6 = arith.constant dense<0.000000e+00> : vector<8x32xf32>
    %16 = vector.multi_reduction <add>, %15, %cst_6 [1] : vector<8x8x32xf32> to vector<8x32xf32>
    %17 = vector.broadcast %12 : vector<8x1xf32> to vector<8x32xf32>
    %18 = arith.divf %16, %17 : vector<8x32xf32>
    %c0_7 = arith.constant 0 : index
    %c0_8 = arith.constant 0 : index
    %19 = vector.load %arg3[%c0_7, %c0_8] : memref<8x32xf32, #tpu.memory_space<vmem>>, vector<8x32xf32>
    tpu.vector_store %arg3[%c0_7, %c0_8], %18 {strides = array<i32>} : memref<8x32xf32, #tpu.memory_space<vmem>>, vector<8x32xf32>,
    return
  }
  func.func @transform_0(%arg0: i32) -> (i32, i32, i32) {
    %c0_i32 = arith.constant 0 : i32
    %c0_i32_0 = arith.constant 0 : i32
    %c0_i32_1 = arith.constant 0 : i32
    return %arg0, %c0_i32, %c0_i32_0 : i32, i32, i32
  }
  func.func @transform_1(%arg0: i32) -> (i32, i32) {
    %c0_i32 = arith.constant 0 : i32
    %c0_i32_0 = arith.constant 0 : i32
    %c0_i32_1 = arith.constant 0 : i32
    return %c0_i32, %c0_i32_0 : i32, i32
  }
  func.func @transform_2(%arg0: i32) -> (i32, i32) {
    %c0_i32 = arith.constant 0 : i32
    %c0_i32_0 = arith.constant 0 : i32
    return %arg0, %c0_i32 : i32, i32
  }
}

</mosaic_0001>

<bundles_post_ra>
// kernel: tpu_custom_call.1
= control target key start
LH: loop header
LB: loop body
LE: loop exit
PB: predicated region body
PF: predicated region fallthrough
CT: control target
= control target key end

     0   :  { %7 = vsyncpa [#allocation3], 0  ;;  %s1087_s0 = inlined_call_operand.hbm [shape: f32[16,8,32], index: 0, kind: input, shape index: {}]   ;;  %s1088_s1 = inlined_call_operand.vmem [shape: f32[1,32], index: 1, kind: input, shape index: {}]   ;;  %s1089_s2 = inlined_call_operand.hbm [shape: f32[16,32], index: 2, kind: output, shape index: {}]  }
   0x1   :  { %9 = vsyncpa [#allocation3 + $0x1], 0 }
   0x2   :  { %10 = vsyncpa [#allocation4], 0 }
   0x3   :  { %12 = vsyncpa [#allocation4 + $0x1], 0  ;;  %s836_s9 = smov 0   ;;  %s838_s10 = smov 0  }
   0x4   :  { %s840_s11 = smov 0   ;;  %s842_s12 = smov 0  }
   0x5 LB: > { %s857_s13 = sadd.s32 4294967295, %s814_s12   ;;  %s624_s14 = sadd.s32 4294967294, %s814_s12   ;;  %s814_s12 = sphi %s842_s12, %s1104_s12   ;;  %s810_s11 = sphi %s840_s11, %s1103_s11   ;;  %s806_s10 = sphi %s838_s10, %s1102_s10   ;;  %s802_s9 = sphi %s836_s9, %s1101_s9  }
   0x6   : > { %s861_s15 = sadd.s32 1, %s814_s12   ;;  %s25_s16 = sadd.s32 1, %s810_s11 }
   0x7   : > { %s22_s17 = ssub.s32 %s814_s12, %s861_s15  ;;  %p32_p0 = scmp.ne.s32.totalorder %s810_s11, %s806_s10 }
   0x8   : > { %p23_p1 = scmp.eq.s32.totalorder %s22_s17, 0  ;;  %p33_p2 = scmp.eq.s32.totalorder %s814_s12, 0 }
   0x9   : > { %p38_p3 = scmp.ne.s32.totalorder %s806_s10, %s802_s9  ;;  %p39_p4 = scmp.eq.s32.totalorder %s857_s13, 0 }
   0xa   : > { %s873_s18 = scalar_select %p23_p1, %s810_s11, %s25_s16  }
   0xb   : > { %p875_p5 = por %p33_p2, %p32_p0  ;;  %p879_p6 = por %p39_p4, %p38_p3 }
   0xc   : > { %p83_p7 = scmp.eq.s32.totalorder %s857_s13, 1  ;;  %p89_p8 = scmp.eq.s32.totalorder %s624_s14, 1 }
   0xd   : > { %s1093_s20 = scalar_select %p879_p6, 1, 0 }
   0xe   : > { %p651_p10 = scmp.lt.s32.totalorder %s814_s12, 2  ;;  %p886_p11 = por %p83_p7, %p32_p0 }
   0xf   : > { %p890_p12 = por %p89_p8, %p38_p3  ;;  %s112_s23 = sand.u32 1, %s810_s11  }
  0x10   : > { %s1094_s21 = scalar_select %p886_p11, 1, 0 }
  0x11   : > { %s1095_s22 = scalar_select %p890_p12, 1, 0 }
  0x12   : > { %s638_s24 = sshll.u32 %s814_s12, 10  ;;  %s627_s25 = sshll.u32 %s112_s23, 6 }
  0x13   : > { %s899_s28 = scalar_lea.hbm %s1087_s0, %s638_s24  ;;  %s116_s29 = scalar_lea.vmem [#allocation2], %s627_s25 }
  0x14   : > { %s123_s30 = sshll.u32 %s116_s29, 4  ;;  %p903_p13 = pnand %p651_p10, %p875_p5  ;;  %s907_s30 = int_to_ptr.vmem [resolvable:$true] %s123_s30 }
  0x15   : > { %s909_s4 = scalar_lea.sflag [#allocation3], %s112_s23  ;;  %s722_s5 = scalar_lea.hbm %s899_s28, 1024 }
  0x16   : > { %p723_p0 = scmp.ne.s32.totalorder %s899_s28, %s722_s5  ;;  %p724_p1 = pneg %p903_p13 }
  0x17   : > { %s727_s8 = scalar_lea.hbm %s1087_s0, 2048  ;;  %p728_p4 = scmp.lt.s32.totalorder %s899_s28, %s1087_s0 }
  0x18   : > { %p725_p2 = pnand %p724_p1, %p723_p0  ;;  %p729_p5 = scmp.lt.s32.totalorder %s727_s8, %s722_s5 }
  0x1a   : > { %p726_p3 = pneg %p725_p2  ;;  %p730_p7 = por %p729_p5, %p728_p4 }
  0x1c   : > { %p731_p8 = pnand %p730_p7, %p726_p3 }
  0x1e   : > { %734 = shalt.err (!%p731_p8)
}
  0x1f   : > { %s735_s17 = scalar_lea.vmem %s907_s30, 1024  ;;  %s816_s19 = smov [#allocation2]  }
  0x20   : > { %p736_p10 = scmp.ne.s32.totalorder %s907_s30, %s735_s17  ;;  %s740_s23 = sshll.u32 %s816_s19, 4  ;;  %s741_s23 = int_to_ptr.vmem [resolvable:$false] %s740_s23 }
  0x21   : > { %s742_s24 = scalar_lea.vmem %s741_s23, 2048  ;;  %p743_p2 = scmp.lt.s32.totalorder %s907_s30, %s741_s23 }
  0x22   : > { %p738_p9 = pnand %p736_p10, %p724_p1  ;;  %p744_p12 = scmp.lt.s32.totalorder %s742_s24, %s735_s17 }
  0x24   : > { %p739_p0 = pneg %p738_p9  ;;  %p745_p11 = por %p744_p12, %p743_p2 }
  0x26   : > { %p746_p6 = pnand %p745_p11, %p739_p0 }
  0x28   : > { %749 = shalt.err (!%p746_p6)
}
  0x29   : > { %s817_s25 = smov 128   ;;  %s818_s26 = smov 8  }
  0x2a   : > { %646 = dma.hbm_to_vmem [thread:$0]  (!%p903_p13), %s899_s28, 1024, %s907_s30, %s909_s4, %s817_s25, %s817_s25, %s818_s26  }
  0x2b   : > { %p630_p9 = scmp.ge.s32.totalorder %s814_s12, 1  ;;  %p131_p1 = scmp.lt.s32.totalorder %s814_s12, 3 }
  0x2d   : > { %p132_p3 = pnand %p630_p9, %p131_p1 }
  0x2e   : > { %s933_s27 = sand.u32 (!%p132_p3), 1, %s806_s10   ;;  %p1097_p6 = scmp.ne.s32.totalorder (!%p132_p3), %s1093_s20, 0 }
  0x2f   : > { %135 = sbr.rel (%p132_p3) target bundleno = 701 (0x2bd), region = 28  ;;  %s631_s29 = sshll.u32 (!%p132_p3), %s933_s27, 6 }
  0x30   : > { %s138_s5 = scalar_lea.sflag (!%p132_p3), [#allocation3], %s933_s27  ;;  %s141_s6 = scalar_lea.vmem (!%p132_p3), [#allocation2], %s631_s29 }
  0x34   : > { %793 = dma.done.wait (%p1097_p6), %s138_s5, 1024  }
  0x35   : > { %795 = vsyncadd (%p1097_p6), %s138_s5, 4294966272  ;;  %v941_v0 = vld [vmem:[%s141_s6] sm:$0xff]  ;;  %vm186_vm0 = vcmask 261120   ;;  %v946_v2 = vld [vmem:[%s141_s6 + $0x10] sm:$0xff]  ;;  %v219_v25 = vlaneseq  ;;  %vm253_vm1 = vcmask 1041409   ;;  %vm255_vm2 = vcmask 1042434  }
  0x36   : > { %v633_v1 = vld [vmem:[%s1088_s1] ss:$0 sm:$0xff]  ;;  %v950_v5 = vld [vmem:[%s141_s6 + $0x8] sm:$0xff]  ;;  %v952_v6 = vld [vmem:[%s141_s6 + $0x18] sm:$0xff]  ;;  %vm257_vm3 = vcmask 1043459   ;;  %vm259_vm4 = vcmask 1044484  }
  0x37   : > { %v178_v3 = vmul.f32 %v633_v1, %v941_v0  ;;  %v180_v4 = vmul.f32 %v633_v1, %v946_v2  ;;  %v179_v7 = vmul.f32 %v633_v1, %v950_v5  ;;  %v181_v8 = vmul.f32 %v633_v1, %v952_v6  ;;  %v956_v9 = vld [vmem:[%s141_s6 + $0x20] sm:$0xff]  ;;  %v958_v10 = vld [vmem:[%s141_s6 + $0x28] sm:$0xff]  ;;  %v966_v17 = vld [vmem:[%s141_s6 + $0x30] sm:$0xff]  ;;  %s632_s20 = sshll.u32 %s933_s27, 3  ;;  %s635_s3 = sshll.u32 %s857_s13, 7 }
  0x38   : > { %v182_v15 = vmul.f32 %v633_v1, %v956_v9  ;;  %v183_v16 = vmul.f32 %v633_v1, %v958_v10  ;;  %v968_v18 = vld [vmem:[%s141_s6 + $0x38] sm:$0xff]  ;;  %v184_v21 = vmul.f32 %v633_v1, %v966_v17  ;;  %v220_v26 = vand.u32 127, %v219_v25  ;;  %s161_s4 = scalar_lea.vmem [#allocation5], %s632_s20  ;;  %s1048_s16 = scalar_lea.hbm %s1089_s2, %s635_s3 }
  0x39   : > { %v187_v11 = vsel %vm186_vm0, %v178_v3, 0.0  ;;  %v193_v12 = vsel %vm186_vm0, %v180_v4, 0.0  ;;  %v190_v13 = vsel %vm186_vm0, %v179_v7, 0.0  ;;  %v196_v14 = vsel %vm186_vm0, %v181_v8, 0.0  ;;  %s554_s7 = sshll.u32 %s161_s4, 4  ;;  %s541_s13 = scalar_lea.sflag [#allocation4], %s933_s27  ;;  %s555_s7 = int_to_ptr.vmem [resolvable:$true] %s554_s7 }
  0x3a   : > { %188 = vadd.xlane.f32.xlu0 %v187_v11  ;;  %194 = vadd.xlane.f32.xlu1 %v193_v12  ;;  %v199_v19 = vsel %vm186_vm0, %v182_v15, 0.0  ;;  %v202_v20 = vsel %vm186_vm0, %v183_v16, 0.0  ;;  %v185_v22 = vmul.f32 %v633_v1, %v968_v18  ;;  %v205_v23 = vsel %vm186_vm0, %v184_v21, 0.0  ;;  %s750_s17 = scalar_lea.vmem %s555_s7, 128  ;;  %p1098_p12 = scmp.ne.s32.totalorder %s1094_s21, 0 }
  0x3b   : > { %v976_v27 = vshrl.u32 %v219_v25, 7  ;;  %vm261_vm5 = vcmask 1045509   ;;  %vm263_vm6 = vcmask 1046534   ;;  %vm265_vm7 = vcmask 1047559   ;;  %p751_p11 = scmp.ne.s32.totalorder %s555_s7, %s750_s17  ;;  %s820_s19 = smov [#allocation5]  }
  0x3c   : > { %v208_v24 = vsel %vm186_vm0, %v185_v22, 0.0  ;;  %vm268_vm8 = vcmask 64512   ;;  %v819_v53 = vmov 0   ;;  %s754_s23 = sshll.u32 %s820_s19, 4  ;;  %s755_s23 = int_to_ptr.vmem [resolvable:$false] %s754_s23 }
  0x3d   : > { %v979_v30 = vsub.s32 %v220_v26, %v976_v27  ;;  %689 = vset.pattern.permute.xlu0 %v819_v53  ;;  %688 = vset.pattern.permute.xlu1 %v819_v53  ;;  %v275_v54 = vsub.s32 0, %v976_v27  ;;  %v279_v55 = vsub.s32 1, %v976_v27  ;;  %v283_v56 = vsub.s32 2, %v976_v27  ;;  %p752_p13 = pnand %p751_p11, %p1098_p12  ;;  %s756_s24 = scalar_lea.vmem %s755_s23, 256 }
  0x3e   : > { %191 = vadd.xlane.f32.xlu0 %v190_v13  ;;  %197 = vadd.xlane.f32.xlu1 %v196_v14  ;;  %v287_v57 = vsub.s32 3, %v976_v27  ;;  %v291_v62 = vsub.s32 4, %v976_v27  ;;  %v295_v11 = vsub.s32 5, %v976_v27  ;;  %v299_v15 = vsub.s32 6, %v976_v27  ;;  %p757_p5 = scmp.lt.s32.totalorder %s555_s7, %s755_s23  ;;  %p758_p7 = scmp.lt.s32.totalorder %s756_s24, %s750_s17 }
  0x3f   : > { %v303_v21 = vsub.s32 7, %v976_v27  ;;  %p753_p4 = pneg %p752_p13 }
  0x40   : > { %p759_p8 = por %p758_p7, %p757_p5 }
  0x42   : > { %200 = vadd.xlane.f32.xlu0 %v199_v19  ;;  %203 = vadd.xlane.f32.xlu1 %v202_v20  ;;  %p760_p10 = pnand %p759_p8, %p753_p4 }
  0x46   : > { %206 = vadd.xlane.f32.xlu0 %v205_v23  ;;  %209 = vadd.xlane.f32.xlu1 %v208_v24 }
  0xc3   : > { %v189_v28 = vpop.xlane.xlu0 %188  ;;  %v195_v29 = vpop.xlane.xlu1 %194 }
  0xc4   : > { %v224_v33 = vrot.slane %v189_v28, %v979_v30  ;;  %v232_v36 = vrot.slane %v195_v29, %v979_v30 }
  0xc7   : > { %v192_v31 = vpop.xlane.xlu0 %191  ;;  %v198_v32 = vpop.xlane.xlu1 %197 }
  0xc8   : > { %v228_v34 = vrot.slane %v192_v31, %v979_v30  ;;  %v236_v35 = vrot.slane %v198_v32, %v979_v30 }
  0xca   : > { %v254_v37 = vsel %vm253_vm1, %v228_v34, %v224_v33 }
  0xcb   : > { %v256_v38 = vsel %vm255_vm2, %v232_v36, %v254_v37  ;;  %v201_v39 = vpop.xlane.xlu0 %200  ;;  %v204_v40 = vpop.xlane.xlu1 %203 }
  0xcc   : > { %v258_v41 = vsel %vm257_vm3, %v236_v35, %v256_v38  ;;  %v240_v42 = vrot.slane %v201_v39, %v979_v30  ;;  %v244_v43 = vrot.slane %v204_v40, %v979_v30 }
  0xce   : > { %v260_v44 = vsel %vm259_vm4, %v240_v42, %v258_v41 }
  0xcf   : > { %v207_v45 = vpop.xlane.xlu0 %206  ;;  %v210_v46 = vpop.xlane.xlu1 %209  ;;  %v262_v49 = vsel %vm261_vm5, %v244_v43, %v260_v44 }
  0xd0   : > { %v248_v47 = vrot.slane %v207_v45, %v979_v30  ;;  %v252_v48 = vrot.slane %v210_v46, %v979_v30 }
  0xd2   : > { %v264_v50 = vsel %vm263_vm6, %v248_v47, %v262_v49 }
  0xd3   : > { %v266_v51 = vsel %vm265_vm7, %v252_v48, %v264_v50 }
  0xd4   : > { %v269_v52 = vsel %vm268_vm8, %v266_v51, -inf }
  0xd5   : > { %270 = vmax.xlane.f32.xlu0 %v269_v52 }
 0x15e   : > { %v271_v58 = vpop.xlane.xlu0 %270 }
 0x15f   : > { %v276_v59 = vrot.slane %v271_v58, %v275_v54  ;;  %v280_v60 = vrot.slane %v271_v58, %v279_v55  ;;  %v284_v61 = vrot.slane %v271_v58, %v283_v56  ;;  %v288_v63 = vrot.slane %v271_v58, %v287_v57 }
 0x160   : > { %v292_v12 = vrot.slane %v271_v58, %v291_v62  ;;  %v296_v16 = vrot.slane %v271_v58, %v295_v11  ;;  %v300_v22 = vrot.slane %v271_v58, %v299_v15  ;;  %v304_v25 = vrot.slane %v271_v58, %v303_v21 }
 0x161   : > { %v313_v1 = vsub.f32 %v189_v28, %v276_v59  ;;  %v314_v3 = vsub.f32 %v192_v31, %v280_v60  ;;  %v315_v4 = vsub.f32 %v195_v29, %v284_v61  ;;  %v316_v13 = vsub.f32 %v198_v32, %v288_v63 }
 0x162   : > { %v317_v19 = vsub.f32 %v201_v39, %v292_v12  ;;  %v318_v23 = vsub.f32 %v204_v40, %v296_v16  ;;  %v319_v26 = vsub.f32 %v207_v45, %v300_v22  ;;  %v320_v32 = vsub.f32 %v210_v46, %v304_v25 }
 0x163   : > { %v321_v7 = vmul.f32 1.442695, %v313_v1  ;;  %v323_v8 = vmul.f32 1.442695, %v314_v3  ;;  %v325_v14 = vmul.f32 1.442695, %v315_v4 }
 0x164   : > { %v327_v20 = vmul.f32 1.442695, %v316_v13  ;;  %v329_v24 = vmul.f32 1.442695, %v317_v19  ;;  %v331_v28 = vmul.f32 1.442695, %v318_v23 }
 0x165   : > { %690 = vpow2.f32 %v321_v7  ;;  %v333_v33 = vmul.f32 1.442695, %v319_v26  ;;  %v335_v35 = vmul.f32 1.442695, %v320_v32 }
 0x166   : > { %692 = vpow2.f32 %v323_v8 }
 0x167   : > { %694 = vpow2.f32 %v325_v14 }
 0x168   : > { %696 = vpow2.f32 %v327_v20 }
 0x169   : > { %698 = vpow2.f32 %v329_v24 }
 0x16a   : > { %700 = vpow2.f32 %v331_v28 }
 0x16b   : > { %702 = vpow2.f32 %v333_v33 }
 0x16c   : > { %704 = vpow2.f32 %v335_v35 }
 0x172   : > { %v691_v29 = vpop.eup %690 }
 0x173   : > { %v693_v31 = vpop.eup %692  ;;  %346 = vperm.xlu1 %688, %v691_v29  }
 0x174   : > { %349 = vperm.xlu0 %689, %v693_v31   ;;  %v695_v34 = vpop.eup %694 }
 0x175   : > { %v697_v27 = vpop.eup %696 }
 0x176   : > { %v699_v36 = vpop.eup %698 }
 0x177   : > { %352 = vperm.xlu1 %688, %v695_v34   ;;  %v701_v37 = vpop.eup %700 }
 0x178   : > { %v703_v38 = vpop.eup %702 }
 0x179   : > { %v705_v39 = vpop.eup %704 }
 0x17b   : > { %355 = vperm.xlu1 %688, %v697_v27  }
 0x17f   : > { %358 = vperm.xlu1 %688, %v699_v36  }
 0x183   : > { %361 = vperm.xlu1 %688, %v701_v37  }
 0x187   : > { %364 = vperm.xlu1 %688, %v703_v38  }
 0x18b   : > { %367 = vperm.xlu1 %688, %v705_v39  }
 0x1ee   : > { %v347_v40 = vpop.permute.xlu1 %346 }
 0x1ef   : > { %v350_v44 = vpop.permute.xlu0 %349  ;;  %v372_v47 = vrot.slane %v347_v40, %v979_v30  ;;  %v420_v1 = vmul.f32 %v347_v40, %v941_v0 }
 0x1f0   : > { %v376_v46 = vrot.slane %v350_v44, %v979_v30  ;;  %v421_v3 = vmul.f32 %v350_v44, %v950_v5 }
 0x1f1   : > { %v428_v8 = vsel %vm186_vm0, %v420_v1, 0.0 }
 0x1f2   : > { %v353_v41 = vpop.permute.xlu1 %352  ;;  %v401_v52 = vsel %vm253_vm1, %v376_v46, %v372_v47  ;;  %v435_v11 = vsel %vm186_vm0, %v421_v3, 0.0  ;;  %v429_v15 = vrot.slane %v428_v8, 4 }
 0x1f3   : > { %v380_v48 = vrot.slane %v353_v41, %v979_v30  ;;  %v422_v4 = vmul.f32 %v353_v41, %v946_v2  ;;  %v436_v2 = vrot.slane %v435_v11, 4 }
 0x1f4   : > { %v430_v21 = vadd.f32 %v429_v15, %v428_v8 }
 0x1f5   : > { %v402_v54 = vsel %vm255_vm2, %v380_v48, %v401_v52  ;;  %v442_v13 = vsel %vm186_vm0, %v422_v4, 0.0  ;;  %v437_v23 = vadd.f32 %v436_v2, %v435_v11 }
 0x1f6   : > { %v356_v42 = vpop.permute.xlu1 %355  ;;  %v443_v16 = vrot.slane %v442_v13, 4  ;;  %v431_v33 = vrot.slane %v430_v21, 2 }
 0x1f7   : > { %v384_v49 = vrot.slane %v356_v42, %v979_v30  ;;  %v423_v7 = vmul.f32 %v356_v42, %v952_v6  ;;  %v438_v27 = vrot.slane %v437_v23, 2 }
 0x1f8   : > { %v444_v25 = vadd.f32 %v443_v16, %v442_v13 }
 0x1f9   : > { %v403_v56 = vsel %vm257_vm3, %v384_v49, %v402_v54  ;;  %v449_v14 = vsel %vm186_vm0, %v423_v7, 0.0  ;;  %v432_v49 = vadd.f32 %v431_v33, %v430_v21 }
 0x1fa   : > { %v359_v43 = vpop.permute.xlu1 %358  ;;  %v450_v19 = vrot.slane %v449_v14, 4  ;;  %v445_v38 = vrot.slane %v444_v25, 2 }
 0x1fb   : > { %v388_v50 = vrot.slane %v359_v43, %v979_v30 }
 0x1fc   : > { %v446_v47 = vadd.f32 %v445_v38, %v444_v25 }
 0x1fd   : > { %v404_v57 = vsel %vm259_vm4, %v388_v50, %v403_v56 }
 0x1fe   : > { %v362_v45 = vpop.permute.xlu1 %361 }
 0x1ff   : > { %v392_v53 = vrot.slane %v362_v45, %v979_v30  ;;  %v425_v12 = vmul.f32 %v362_v45, %v958_v10  ;;  %v439_v45 = vadd.f32 %v438_v27, %v437_v23 }
 0x201   : > { %v405_v60 = vsel %vm261_vm5, %v392_v53, %v404_v57  ;;  %v440_v53 = vrot.slane %v439_v45, 1  ;;  %v433_v57 = vrot.slane %v432_v49, 1 }
 0x202   : > { %v365_v51 = vpop.permute.xlu1 %364 }
 0x203   : > { %v396_v55 = vrot.slane %v365_v51, %v979_v30  ;;  %v426_v0 = vmul.f32 %v365_v51, %v966_v17  ;;  %v451_v17 = vadd.f32 %v450_v19, %v449_v14  ;;  %v434_v8 = vadd.f32 %v433_v57, %v432_v49 }
 0x205   : > { %v406_v61 = vsel %vm263_vm6, %v396_v55, %v405_v60  ;;  %v470_v20 = vsel %vm186_vm0, %v426_v0, 0.0  ;;  %v452_v41 = vrot.slane %v451_v17, 2  ;;  %v447_v55 = vrot.slane %v446_v47, 1 }
 0x206   : > { %v368_v58 = vpop.permute.xlu1 %367  ;;  %v471_v26 = vrot.slane %v470_v20, 4 }
 0x207   : > { %v400_v59 = vrot.slane %v368_v58, %v979_v30  ;;  %v424_v30 = vmul.f32 %v359_v43, %v956_v9  ;;  %v427_v5 = vmul.f32 %v368_v58, %v968_v18  ;;  %v463_v9 = vsel %vm186_vm0, %v425_v12, 0.0 }
 0x208   : > { %v464_v24 = vrot.slane %v463_v9, 4  ;;  %v472_v39 = vadd.f32 %v471_v26, %v470_v20  ;;  %v453_v50 = vadd.f32 %v452_v41, %v451_v17  ;;  %v448_v3 = vadd.f32 %v447_v55, %v446_v47 }
 0x209   : > { %v407_v62 = vsel %vm265_vm7, %v400_v59, %v406_v61  ;;  %v456_v6 = vsel %vm186_vm0, %v424_v30, 0.0  ;;  %v477_v22 = vsel %vm186_vm0, %v427_v5, 0.0 }
 0x20a   : > { %v409_v63 = vsel %vm268_vm8, %v407_v62, 0.0  ;;  %v457_v10 = vrot.slane %v456_v6, 4  ;;  %v478_v18 = vrot.slane %v477_v22, 4  ;;  %v465_v36 = vadd.f32 %v464_v24, %v463_v9 }
 0x20b   : > { %410 = vadd.xlane.f32.xlu1 %v409_v63  ;;  %v473_v48 = vrot.slane %v472_v39, 2  ;;  %v454_v58 = vrot.slane %v453_v50, 1  ;;  %v441_v62 = vadd.f32 %v440_v53, %v439_v45 }
 0x20c   : > { %v458_v34 = vadd.f32 %v457_v10, %v456_v6  ;;  %v479_v42 = vadd.f32 %v478_v18, %v477_v22  ;;  %v466_v46 = vrot.slane %v465_v36, 2 }
 0x20d   : > { %v474_v56 = vadd.f32 %v473_v48, %v472_v39  ;;  %v455_v30 = vadd.f32 %v454_v58, %v453_v50 }
 0x20e   : > { %v459_v44 = vrot.slane %v458_v34, 2  ;;  %v480_v51 = vrot.slane %v479_v42, 2  ;;  %v467_v54 = vadd.f32 %v466_v46, %v465_v36 }
 0x20f   : > { %v475_v4 = vrot.slane %v474_v56, 1 }
 0x210   : > { %v460_v52 = vadd.f32 %v459_v44, %v458_v34  ;;  %v481_v59 = vadd.f32 %v480_v51, %v479_v42  ;;  %v468_v63 = vrot.slane %v467_v54, 1 }
 0x211   : > { %v476_v9 = vadd.f32 %v475_v4, %v474_v56 }
 0x212   : > { %v461_v60 = vrot.slane %v460_v52, 1  ;;  %v482_v11 = vrot.slane %v481_v59, 1  ;;  %v469_v5 = vadd.f32 %v468_v63, %v467_v54 }
 0x214   : > { %v462_v14 = vadd.f32 %v461_v60, %v460_v52  ;;  %v483_v22 = vadd.f32 %v482_v11, %v481_v59 }
 0x294   : > { %v411_v28 = vpop.xlane.xlu1 %410 }
 0x295   : > { %v485_v29 = vrot.slane %v411_v28, 1  ;;  %v486_v31 = vrot.slane %v411_v28, 2  ;;  %v487_v32 = vrot.slane %v411_v28, 3  ;;  %v488_v35 = vrot.slane %v411_v28, 4 }
 0x296   : > { %706 = vrcp.f32 %v411_v28  ;;  %v489_v37 = vrot.slane %v411_v28, 5  ;;  %v490_v40 = vrot.slane %v411_v28, 6  ;;  %v491_v43 = vrot.slane %v411_v28, 7 }
 0x297   : > { %708 = vrcp.f32 %v485_v29 }
 0x298   : > { %710 = vrcp.f32 %v486_v31 }
 0x299   : > { %712 = vrcp.f32 %v487_v32 }
 0x29a   : > { %714 = vrcp.f32 %v488_v35 }
 0x29b   : > { %716 = vrcp.f32 %v489_v37 }
 0x29c   : > { %718 = vrcp.f32 %v490_v40 }
 0x29d   : > { %720 = vrcp.f32 %v491_v43 }
 0x2a3   : > { %v707_v61 = vpop.eup %706 }
 0x2a4   : > { %v709_v1 = vpop.eup %708  ;;  %v501_v2 = vmul.f32 %v707_v61, %v434_v8 }
 0x2a5   : > { %v711_v7 = vpop.eup %710  ;;  %v503_v12 = vmul.f32 %v709_v1, %v441_v62 }
 0x2a6   : > { %v713_v13 = vpop.eup %712  ;;  %v505_v0 = vmul.f32 %v711_v7, %v448_v3 }
 0x2a7   : > { %v715_v15 = vpop.eup %714  ;;  %v507_v6 = vmul.f32 %v713_v13, %v455_v30  ;;  %v524_v16 = vrot.slane %v503_v12, 7 }
 0x2a8   : > { %v717_v19 = vpop.eup %716  ;;  %v509_v20 = vmul.f32 %v715_v15, %v462_v14  ;;  %v526_v21 = vrot.slane %v505_v0, 6 }
 0x2a9   : > { %v719_v10 = vpop.eup %718  ;;  %v511_v23 = vmul.f32 %v717_v19, %v469_v5  ;;  %v525_v24 = vsel %vm253_vm1, %v524_v16, %v501_v2  ;;  %v528_v25 = vrot.slane %v507_v6, 5 }
 0x2aa   : > { %v721_v17 = vpop.eup %720  ;;  %v513_v26 = vmul.f32 %v719_v10, %v476_v9  ;;  %v527_v28 = vsel %vm255_vm2, %v526_v21, %v525_v24  ;;  %v530_v18 = vrot.slane %v509_v20, 4 }
 0x2ab   : > { %v515_v29 = vmul.f32 %v721_v17, %v483_v22  ;;  %v529_v31 = vsel %vm257_vm3, %v528_v25, %v527_v28  ;;  %v532_v32 = vrot.slane %v511_v23, 3 }
 0x2ac   : > { %v531_v33 = vsel %vm259_vm4, %v530_v18, %v529_v31  ;;  %v534_v34 = vrot.slane %v513_v26, 2 }
 0x2ad   : > { %v533_v35 = vsel %vm261_vm5, %v532_v32, %v531_v33  ;;  %v536_v27 = vrot.slane %v515_v29, 1 }
 0x2ae   : > { %v535_v36 = vsel %vm263_vm6, %v534_v34, %v533_v35 }
 0x2af   : > { %v537_v37 = vsel %vm265_vm7, %v536_v27, %v535_v36 }
 0x2b0   : > { %539 = vst.msk [vmem:[%s161_s4] sm:$0xff] %vm186_vm0, %v537_v37 }
 0x2b1   : > { %763 = shalt.err (!%p760_p10)
}
 0x2b2   : > { %s764_s25 = scalar_lea.hbm %s1048_s16, 128  ;;  %s768_s29 = scalar_lea.hbm %s1089_s2, 256 }
 0x2b3   : > { %p765_p0 = scmp.ne.s32.totalorder %s1048_s16, %s764_s25  ;;  %p769_p1 = scmp.lt.s32.totalorder %s1048_s16, %s1089_s2 }
 0x2b4   : > { %p770_p3 = scmp.lt.s32.totalorder %s768_s29, %s764_s25 }
 0x2b5   : > { %p766_p2 = pnand %p765_p0, %p1098_p12 }
 0x2b6   : > { %p771_p6 = por %p770_p3, %p769_p1 }
 0x2b7   : > { %p767_p9 = pneg %p766_p2 }
 0x2b9   : > { %p772_p11 = pnand %p771_p6, %p767_p9 }
 0x2bb   : > { %775 = shalt.err (!%p772_p11)
}
 0x2bc   : > { %641 = dma.vmem_to_hbm [thread:$0]  (%p1098_p12), %s555_s7, 128, %s1048_s16, %s541_s13  }
 0x2bd PF: > { %s566_s28 = sand.u32 1, %s802_s9   ;;  %p1099_p13 = scmp.ne.s32.totalorder %s1095_s22, 0 }
 0x2be   : > { %p1100_p4 = scmp.ge.s32.totalorder %s814_s12, 2  ;;  %s567_s30 = scalar_lea.sflag [#allocation4], %s566_s28 }
 0x2c0   : > { %p648_p5 = pnand %p1100_p4, %p1099_p13 }
 0x2c2   : > { %p649_p7 = pneg %p648_p5 }
 0x2c4   : > { %797 = dma.done.wait (%p649_p7), %s567_s30, 128  }
 0x2c5   : > { %799 = vsyncadd (%p649_p7), %s567_s30, 4294967168  ;;  %p15_p8 = scmp.ge.s32.totalorder %s861_s15, 4   ;;  %s1101_s9 = smov %s806_s10 }
 0x2c6   : > { %s1102_s10 = smov %s810_s11  ;;  %s1103_s11 = smov %s873_s18 }
 0x2c7   : > { %s1104_s12 = smov %s861_s15  ;;  %17 = sbr.rel (!%p15_p8) target bundleno = 5 (0x5), region = 73 }
 0x2cc   :  { %572 = vsyncpa [#allocation3], 1 }
 0x2cd   :  { %574 = vsyncpa [#allocation3 + $0x1], 1 }
 0x2ce   :  { %575 = vsyncpa [#allocation4], 1 }
 0x2cf   :  { %577 = vsyncpa [#allocation4 + $0x1], 1 }

</bundles_post_ra>
